<compile_context>
chip_gen: v6e
topology: v6e:2x2x1
jax: 0.10.0
libtpu: 0.0.40
codegen_flags: <defaults>
</compile_context>

<pallas_src>
import jax
import jax.numpy as jnp
from jax.experimental import pallas as pl
from jax.experimental.pallas import tpu as pltpu


def _round_up(n, m):
    return -(-n // m) * m


def winenet_kernel(xt_ref, w1_ref, b1_ref, w2_ref, b2_ref, w3_ref, b3_ref, o_ref):
    # fc1 + ReLU: bf16 (64, 11) @ bf16 (11, TB) -> f32 (64, TB)
    h1 = jnp.dot(w1_ref[...], xt_ref[...], preferred_element_type=jnp.float32)
    h1 = jnp.maximum(h1 + b1_ref[...], 0.0).astype(jnp.bfloat16)
    # fc2 + ReLU: bf16 (32, 64) @ bf16 (64, TB) -> f32 (32, TB)
    h2 = jnp.dot(w2_ref[...], h1, preferred_element_type=jnp.float32)
    h2 = jnp.maximum(h2 + b2_ref[...], 0.0)
    # fc3 (out=1): f32 VPU multiply + sublane reduce -> lane-dense (1, TB) store.
    out = jnp.sum(h2 * w3_ref[...], axis=0, keepdims=True) + b3_ref[...]
    o_ref[...] = out.astype(o_ref.dtype)


def _tile_plan(B, tb):
    """Lane-dense batch tile, capped at tb, with an even tile count when >1."""
    b_ceil = _round_up(B, 128)
    tb_eff = min(max(128, _round_up(tb, 128)), b_ceil)
    n_tiles = -(-b_ceil // tb_eff)
    if n_tiles > 1 and n_tiles % 2 == 1:   # even split for v7x megacore
        tb_eff = _round_up(-(-b_ceil // (n_tiles + 1)), 128)
        n_tiles = -(-b_ceil // tb_eff)
    return tb_eff, n_tiles, n_tiles * tb_eff


def _winenet_pallas(x_t, params, tb_eff, n_tiles):
    """x_t: (11, b_pad) bf16 feature-major, b_pad == n_tiles * tb_eff."""
    w1, b1, w2, b2, w3, b3 = params
    F, b_pad = x_t.shape

    const = lambda shape: pl.BlockSpec(shape, lambda i: (0, 0))

    # Small-tile / low-latency variant only: deepen the x pipeline so DMA issue
    # latency hides behind the very short per-step compute.  Neutral at large TB.
    if n_tiles > 2 and tb_eff <= 1024:
        x_spec = pl.BlockSpec((F, tb_eff), lambda i: (0, i),
                              pipeline_mode=pl.Buffered(3))
    else:
        x_spec = pl.BlockSpec((F, tb_eff), lambda i: (0, i))

    flops = 2 * b_pad * (11 * 64 + 64 * 32 + 32 * 1)
    bytes_accessed = (
        x_t.size * x_t.dtype.itemsize
        + b_pad * 4
        + sum(int(a.size) * a.dtype.itemsize for a in (w1, b1, w2, b2, w3, b3))
    )

    return pl.pallas_call(
        winenet_kernel,
        out_shape=jax.ShapeDtypeStruct((1, b_pad), jnp.float32),
        grid=(n_tiles,),
        in_specs=[
            x_spec,                               # x tile streams along batch
            const(w1.shape), const(b1.shape),     # weights/biases stay VMEM-resident
            const(w2.shape), const(b2.shape),
            const(w3.shape), const(b3.shape),
        ],
        out_specs=pl.BlockSpec((1, tb_eff), lambda i: (0, i)),
        compiler_params=pltpu.CompilerParams(
            dimension_semantics=("parallel",),     # 2-TC split on v7x, neutral elsewhere
            vmem_limit_bytes=48 * 1024 * 1024,     # headroom for TB=32768 intermediates
        ),
        cost_estimate=pl.CostEstimate(
            flops=flops, transcendentals=0, bytes_accessed=bytes_accessed),
    )(x_t, w1, b1, w2, b2, w3, b3)


def winenet_forward(x, params, *, tb=32768):
    """x: (B, 11) float.  Returns (B, 1) f32.

    One fused host-side pre-pass (transpose + bf16 cast + pad) feeds the kernel.
    """
    B, F = x.shape
    tb_eff, n_tiles, b_pad = _tile_plan(B, tb)
    x_t = jnp.pad(x.T.astype(jnp.bfloat16), ((0, 0), (0, b_pad - B)))  # (11, b_pad)
    out_t = _winenet_pallas(x_t, params, tb_eff, n_tiles)
    return out_t[0, :B][:, None]  # (B, 1)


def winenet_forward_t(x_t, params, *, tb=32768):
    """Fast path: x_t already feature-major (11, B) bf16 — no host pre-pass
    when B is a multiple of the tile size."""
    F, B = x_t.shape
    tb_eff, n_tiles, b_pad = _tile_plan(B, tb)
    x_t = x_t.astype(jnp.bfloat16)
    if b_pad != B:
        x_t = jnp.pad(x_t, ((0, 0), (0, b_pad - B)))
    out_t = _winenet_pallas(x_t, params, tb_eff, n_tiles)
    return out_t[0, :B][:, None]


def init_params(key):
    """nn.Linear-style init (U[-1/sqrt(fan_in), +1/sqrt(fan_in)]).

    Kernel layout: W as (out, in) with w1/w2 stored bf16 (f32 accumulation in
    the kernel); biases as f32 (out, 1) columns; fc3 weight as the f32 (32, 1)
    column used by the VPU-reduce epilogue, b3 as (1, 1).
    """
    def linear(key, fan_in, fan_out):
        kw, kb = jax.random.split(key)
        bound = 1.0 / jnp.sqrt(fan_in)
        w = jax.random.uniform(kw, (fan_out, fan_in), jnp.float32, -bound, bound)
        b = jax.random.uniform(kb, (fan_out, 1), jnp.float32, -bound, bound)
        return w, b

    k1, k2, k3 = jax.random.split(key, 3)
    w1, b1 = linear(k1, 11, 64)
    w2, b2 = linear(k2, 64, 32)
    w3, b3 = linear(k3, 32, 1)
    return (w1.astype(jnp.bfloat16), b1,
            w2.astype(jnp.bfloat16), b2,
            w3.T, b3)


def reference_forward(x, params):
    """Pure-JAX reference matching the kernel's numerics (bf16 operands, f32 accum)."""
    w1, b1, w2, b2, w3, b3 = params
    hi = jax.lax.Precision.HIGHEST
    up = lambda a: a.astype(jnp.float32)
    xb = up(x.astype(jnp.bfloat16))
    h1 = jnp.maximum(jnp.dot(xb, up(w1).T, precision=hi) + b1.T, 0.0)
    h1 = up(h1.astype(jnp.bfloat16))
    h2 = jnp.maximum(jnp.dot(h1, up(w2).T, precision=hi) + b2.T, 0.0)
    return jnp.dot(h2, w3, precision=hi) + b3


if __name__ == "__main__":
    key = jax.random.PRNGKey(0)
    kx, kp = jax.random.split(key)

    B = 8  # tiny functional check; the Pallas path is intended for large-B inference
    x = jax.random.normal(kx, (B, 11), dtype=jnp.float32)
    params = init_params(kp)

    out = jax.block_until_ready(winenet_forward(x, params))
    ref = reference_forward(x, params)

    assert out.shape == (B, 1)
    assert jnp.allclose(out, ref, atol=2e-3, rtol=2e-3), (
        f"mismatch vs reference, max abs err = {float(jnp.max(jnp.abs(out - ref)))}")

    print("KERNEL_OK")
</pallas_src>

<mosaic_0001>
module attributes {stable_mosaic.version = 11 : i64} {
  func.func @winenet_kernel(%arg0: i32, %arg1: memref<11x128xbf16, #tpu.memory_space<vmem>>, %arg2: memref<64x11xbf16, #tpu.memory_space<vmem>>, %arg3: memref<64x1xf32, #tpu.memory_space<vmem>>, %arg4: memref<32x64xbf16, #tpu.memory_space<vmem>>, %arg5: memref<32x1xf32, #tpu.memory_space<vmem>>, %arg6: memref<32x1xf32, #tpu.memory_space<vmem>>, %arg7: memref<1x1xf32, #tpu.memory_space<vmem>>, %arg8: memref<1x128xf32, #tpu.memory_space<vmem>>) attributes {dimension_semantics = [#tpu.dimension_semantics<parallel>], iteration_bounds = array<i64: 1>, scalar_prefetch = 0 : i64, scratch_operands = 0 : i64, tpu.core_type = #tpu.core_type<tc>, window_params = [{transform_indices = @transform_0, window_bounds = array<i64: 11, 128>}, {pipeline_mode = #tpu.pipeline_mode<synchronous>, transform_indices = @transform_1, window_bounds = array<i64: 64, 11>}, {pipeline_mode = #tpu.pipeline_mode<synchronous>, transform_indices = @transform_2, window_bounds = array<i64: 64, 1>}, {pipeline_mode = #tpu.pipeline_mode<synchronous>, transform_indices = @transform_3, window_bounds = array<i64: 32, 64>}, {pipeline_mode = #tpu.pipeline_mode<synchronous>, transform_indices = @transform_4, window_bounds = array<i64: 32, 1>}, {pipeline_mode = #tpu.pipeline_mode<synchronous>, transform_indices = @transform_5, window_bounds = array<i64: 32, 1>}, {pipeline_mode = #tpu.pipeline_mode<synchronous>, transform_indices = @transform_6, window_bounds = array<i64: 1, 1>}, {transform_indices = @transform_7, window_bounds = array<i64: 1, 128>}]} {
    %c0 = arith.constant 0 : index
    %c0_0 = arith.constant 0 : index
    %0 = vector.load %arg2[%c0, %c0_0] : memref<64x11xbf16, #tpu.memory_space<vmem>>, vector<64x11xbf16>
    %c0_1 = arith.constant 0 : index
    %c0_2 = arith.constant 0 : index
    %1 = vector.load %arg1[%c0_1, %c0_2] : memref<11x128xbf16, #tpu.memory_space<vmem>>, vector<11x128xbf16>
    %cst = arith.constant dense<0.000000e+00> : vector<64x128xf32>
    %2 = tpu.matmul %0, %1, %cst {dimension_numbers = #tpu.dot_dimension_numbers<[1], [0], [0], [1], [0, 0, 1, 1], [], []>} : vector<64x11xbf16>, vector<11x128xbf16>, vector<64x128xf32> -> vector<64x128xf32>
    %c0_3 = arith.constant 0 : index
    %c0_4 = arith.constant 0 : index
    %3 = vector.load %arg3[%c0_3, %c0_4] : memref<64x1xf32, #tpu.memory_space<vmem>>, vector<64x1xf32>
    %4 = vector.broadcast %3 : vector<64x1xf32> to vector<64x128xf32>
    %5 = arith.addf %2, %4 : vector<64x128xf32>
    %cst_5 = arith.constant 0.000000e+00 : f32
    %6 = vector.broadcast %cst_5 : f32 to vector<64x128xf32>
    %7 = arith.maximumf %5, %6 : vector<64x128xf32>
    %8 = arith.truncf %7 : vector<64x128xf32> to vector<64x128xbf16>
    %c0_6 = arith.constant 0 : index
    %c0_7 = arith.constant 0 : index
    %9 = vector.load %arg4[%c0_6, %c0_7] : memref<32x64xbf16, #tpu.memory_space<vmem>>, vector<32x64xbf16>
    %cst_8 = arith.constant dense<0.000000e+00> : vector<32x128xf32>
    %10 = tpu.matmul %9, %8, %cst_8 {dimension_numbers = #tpu.dot_dimension_numbers<[1], [0], [0], [1], [0, 0, 1, 1], [], []>} : vector<32x64xbf16>, vector<64x128xbf16>, vector<32x128xf32> -> vector<32x128xf32>
    %c0_9 = arith.constant 0 : index
    %c0_10 = arith.constant 0 : index
    %11 = vector.load %arg5[%c0_9, %c0_10] : memref<32x1xf32, #tpu.memory_space<vmem>>, vector<32x1xf32>
    %12 = vector.broadcast %11 : vector<32x1xf32> to vector<32x128xf32>
    %13 = arith.addf %10, %12 : vector<32x128xf32>
    %cst_11 = arith.constant 0.000000e+00 : f32
    %14 = vector.broadcast %cst_11 : f32 to vector<32x128xf32>
    %15 = arith.maximumf %13, %14 : vector<32x128xf32>
    %c0_12 = arith.constant 0 : index
    %c0_13 = arith.constant 0 : index
    %16 = vector.load %arg6[%c0_12, %c0_13] : memref<32x1xf32, #tpu.memory_space<vmem>>, vector<32x1xf32>
    %17 = vector.broadcast %16 : vector<32x1xf32> to vector<32x128xf32>
    %18 = arith.mulf %15, %17 : vector<32x128xf32>
    %cst_14 = arith.constant dense<0.000000e+00> : vector<128xf32>
    %19 = vector.multi_reduction <add>, %18, %cst_14 [0] : vector<32x128xf32> to vector<128xf32>
    %20 = vector.shape_cast %19 : vector<128xf32> to vector<1x128xf32>
    %c0_15 = arith.constant 0 : index
    %c0_16 = arith.constant 0 : index
    %21 = vector.load %arg7[%c0_15, %c0_16] : memref<1x1xf32, #tpu.memory_space<vmem>>, vector<1x1xf32>
    %22 = vector.broadcast %21 : vector<1x1xf32> to vector<1x128xf32>
    %23 = arith.addf %20, %22 : vector<1x128xf32>
    %c0_17 = arith.constant 0 : index
    %c0_18 = arith.constant 0 : index
    %24 = vector.load %arg8[%c0_17, %c0_18] : memref<1x128xf32, #tpu.memory_space<vmem>>, vector<1x128xf32>
    tpu.vector_store %arg8[%c0_17, %c0_18], %23 {strides = array<i32>} : memref<1x128xf32, #tpu.memory_space<vmem>>, vector<1x128xf32>,
    return
  }
  func.func @transform_0(%arg0: i32) -> (i32, i32) {
    %c0_i32 = arith.constant 0 : i32
    %c0_i32_0 = arith.constant 0 : i32
    return %c0_i32, %arg0 : i32, i32
  }
  func.func @transform_1(%arg0: i32) -> (i32, i32) {
    %c0_i32 = arith.constant 0 : i32
    %c0_i32_0 = arith.constant 0 : i32
    %c0_i32_1 = arith.constant 0 : i32
    return %c0_i32, %c0_i32_0 : i32, i32
  }
  func.func @transform_2(%arg0: i32) -> (i32, i32) {
    %c0_i32 = arith.constant 0 : i32
    %c0_i32_0 = arith.constant 0 : i32
    %c0_i32_1 = arith.constant 0 : i32
    return %c0_i32, %c0_i32_0 : i32, i32
  }
  func.func @transform_3(%arg0: i32) -> (i32, i32) {
    %c0_i32 = arith.constant 0 : i32
    %c0_i32_0 = arith.constant 0 : i32
    %c0_i32_1 = arith.constant 0 : i32
    return %c0_i32, %c0_i32_0 : i32, i32
  }
  func.func @transform_4(%arg0: i32) -> (i32, i32) {
    %c0_i32 = arith.constant 0 : i32
    %c0_i32_0 = arith.constant 0 : i32
    %c0_i32_1 = arith.constant 0 : i32
    return %c0_i32, %c0_i32_0 : i32, i32
  }
  func.func @transform_5(%arg0: i32) -> (i32, i32) {
    %c0_i32 = arith.constant 0 : i32
    %c0_i32_0 = arith.constant 0 : i32
    %c0_i32_1 = arith.constant 0 : i32
    return %c0_i32, %c0_i32_0 : i32, i32
  }
  func.func @transform_6(%arg0: i32) -> (i32, i32) {
    %c0_i32 = arith.constant 0 : i32
    %c0_i32_0 = arith.constant 0 : i32
    %c0_i32_1 = arith.constant 0 : i32
    return %c0_i32, %c0_i32_0 : i32, i32
  }
  func.func @transform_7(%arg0: i32) -> (i32, i32) {
    %c0_i32 = arith.constant 0 : i32
    %c0_i32_0 = arith.constant 0 : i32
    return %c0_i32, %arg0 : i32, i32
  }
}

</mosaic_0001>

<bundles_post_ra>
// kernel: tpu_custom_call.1
= control target key start
LH: loop header
LB: loop body
LE: loop exit
PB: predicated region body
PF: predicated region fallthrough
CT: control target
= control target key end

     0   :  { %s575_s0 = inlined_call_operand.vmem [shape: bf16[11,128], index: 0, kind: input, shape index: {}]   ;;  %s576_s1 = inlined_call_operand.vmem [shape: bf16[64,11], index: 1, kind: input, shape index: {}]   ;;  %s577_s2 = inlined_call_operand.vmem [shape: f32[64,1], index: 2, kind: input, shape index: {}]   ;;  %s578_s3 = inlined_call_operand.vmem [shape: bf16[32,64], index: 3, kind: input, shape index: {}]   ;;  %s579_s4 = inlined_call_operand.vmem [shape: f32[32,1], index: 4, kind: input, shape index: {}]   ;;  %s580_s5 = inlined_call_operand.vmem [shape: f32[32,1], index: 5, kind: input, shape index: {}]   ;;  %s581_s6 = inlined_call_operand.<no memory space> [shape: f32[1,1], index: 6, kind: input, shape index: {}]   ;;  %s582_s7 = inlined_call_operand.hbm [shape: f32[1,128], index: 7, kind: output, shape index: {}]  }
   0x1   :  { %v12_v0 = vstv %s581_s6 }
   0x2   :  { %13 = vst [vmem:[#allocation2] sm:$0x1] %v12_v0 }
   0x3   :  { %v422_v1 = vld [vmem:[%s575_s0] sm:$0x3f]   ;;  %vm126_vm0 = vcmask 1044480   ;;  %vm127_vm1 = vcmask 1045504   ;;  %v451_v3 = vmov 65535   ;;  %vm113_vm2 = vcmask 89088  }
   0x4   :  { %v423_v2 = vld [vmem:[%s576_s1] sm:$0xff]   ;;  %v128_v4 = vsel %vm126_vm0, 4294967295, %v451_v3  ;;  %v452_v7 = vmov 0   ;;  %v46_v8 = vld [vmem:[%s577_s2 + $0x30] sm:$0xff]  ;;  %v424_v9 = vld [vmem:[%s576_s1 + $0x8] sm:$0xff]  }
   0x5   :  { %v129_v5 = vsel %vm127_vm1, %v128_v4, 0  ;;  %397 = vmatprep.mubr.msk.bf16.mxu0 %vm113_vm2, %v423_v2  ;;  %420 = vset.pattern.permute.xlu0 %v452_v7  ;;  %v44_v10 = vld [vmem:[%s577_s2 + $0x20] sm:$0xff]  ;;  %v425_v11 = vld [vmem:[%s576_s1 + $0x10] sm:$0xff]   ;;  %v47_v12 = vld [vmem:[%s577_s2 + $0x38] sm:$0xff] }
   0x6   :  { %v131_v6 = vand.u32 %v422_v1, %v129_v5  ;;  %421 = vset.pattern.permute.xlu1 %v452_v7  ;;  %80 = vperm.xlu0 %420, %v46_v8   ;;  %v45_v13 = vld [vmem:[%s577_s2 + $0x28] sm:$0xff]  ;;  %v42_v14 = vld [vmem:[%s577_s2 + $0x10] sm:$0xff]  ;;  %v43_v15 = vld [vmem:[%s577_s2 + $0x18] sm:$0xff] }
   0x7   :  { %70 = vperm.xlu1 %421, %v44_v10  }
   0x8   :  { %395 = vmatprep.subr.bf16.mxu0 %v131_v6 }
   0x9   :  { %396 = vmatpush3.bf16.msra.mxu0 %v131_v6 }
   0xa   :  { %85 = vperm.xlu0 %420, %v47_v12  }
   0xb   :  { %75 = vperm.xlu1 %421, %v45_v13  }
   0xc   :  { %398 = vmatmul.mubr.msk.bf16.vlgmr.msra.gmra.mxu0 %vm113_vm2, %v424_v9 }
   0xd   :  { %401 = vmatprep.mubr.msk.bf16.mxu0 %vm113_vm2, %v425_v11 }
   0xe   :  { %14 = vsyncpa [#allocation4], 0  ;;  %v426_v16 = vld [vmem:[%s576_s1 + $0x18] sm:$0xff]   ;;  %60 = vperm.xlu0 %420, %v42_v14   ;;  %v40_v17 = vld [vmem:[%s577_s2] sm:$0xff]  ;;  %vm248_vm3 = vcmask 523264  }
   0xf   :  { %65 = vperm.xlu1 %421, %v43_v15   ;;  %v41_v18 = vld [vmem:[%s577_s2 + $0x8] sm:$0xff]  ;;  %v214_v19 = vld [vmem:[%s579_s4] sm:$0xff]  ;;  %v216_v21 = vld [vmem:[%s579_s4 + $0x10] sm:$0xff] }
  0x10   :  { %v215_v20 = vld [vmem:[%s579_s4 + $0x8] sm:$0xff]  ;;  %v217_v22 = vld [vmem:[%s579_s4 + $0x18] sm:$0xff]  ;;  %v308_v23 = vld [vmem:[%s580_s5] sm:$0xff] }
  0x11   :  { %v309_v24 = vld [vmem:[%s580_s5 + $0x8] sm:$0xff]  ;;  %v310_v25 = vld [vmem:[%s580_s5 + $0x10] sm:$0xff]  ;;  %v311_v26 = vld [vmem:[%s580_s5 + $0x18] sm:$0xff] }
  0x12   :  { %50 = vperm.xlu0 %420, %v40_v17   ;;  %v345_v27 = vld [vmem:[#allocation2] sm:$0x1]  ;;  %v428_v1 = vld [vmem:[%s578_s3 + $0x8] sm:$0xff]  }
  0x13   :  { %55 = vperm.xlu1 %421, %v41_v18   ;;  %v427_v28 = vld [vmem:[%s578_s3] sm:$0xff]   ;;  %s453_s3 = smov [#allocation3]  }
  0x14   :  { %402 = vmatmul.mubr.msk.bf16.gmra.mxu0 %vm113_vm2, %v426_v16  ;;  %413 = vmatprep.mubr.msk.bf16.mxu1 %vm248_vm3, %v427_v28  ;;  %v351_v28 = vlaneseq  ;;  %s363_s18 = sshll.u32 %s453_s3, 4  ;;  %s364_s18 = int_to_ptr.vmem [resolvable:$true] %s363_s18 }
  0x15   :  { %s429_s19 = scalar_lea.vmem %s364_s18, 16  ;;  %s433_s20 = scalar_lea.vmem %s364_s18, 32 }
  0x16   :  { %220 = vperm.xlu0 %420, %v214_v19   ;;  %p430_p0 = scmp.ne.s32.totalorder %s364_s18, %s429_s19  ;;  %p434_p1 = scmp.lt.s32.totalorder %s364_s18, %s364_s18 }
  0x17   :  { %225 = vperm.xlu1 %421, %v215_v20   ;;  %p435_p2 = scmp.lt.s32.totalorder %s433_s20, %s429_s19 }
  0x19   :  { %p436_p3 = por %p435_p2, %p434_p1 }
  0x1a   :  { %230 = vperm.xlu0 %420, %v216_v21  }
  0x1b   :  { %235 = vperm.xlu1 %421, %v217_v22   ;;  %p437_p4 = pnand %p436_p3, %p430_p0 }
  0x1e   :  { %314 = vperm.xlu0 %420, %v308_v23  }
  0x1f   :  { %319 = vperm.xlu1 %421, %v309_v24  }
  0x22   :  { %324 = vperm.xlu0 %420, %v310_v25  }
  0x23   :  { %329 = vperm.xlu1 %421, %v311_v26  }
  0x26   :  { %348 = vperm.xlu0 %420, %v345_v27  }
  0x81   :  { %v81_v31 = vpop.permute.xlu0 %80 }
  0x82   :  { %v71_v29 = vpop.permute.xlu1 %70 }
  0x85   :  { %v86_v36 = vpop.permute.xlu0 %85 }
  0x86   :  { %v76_v34 = vpop.permute.xlu1 %75 }
  0x89   :  { %v61_v44 = vpop.permute.xlu0 %60 }
  0x8a   :  { %v66_v40 = vpop.permute.xlu1 %65 }
  0x8d   :  { %v51_v58 = vpop.permute.xlu0 %50 }
  0x8e   :  { %v56_v54 = vpop.permute.xlu1 %55 }
  0x91   :  { %v221_v2 = vpop.permute.xlu0 %220 }
  0x92   :  { %v226_v3 = vpop.permute.xlu1 %225 }
  0x95   :  { %v231_v4 = vpop.permute.xlu0 %230 }
  0x96   :  { %v236_v6 = vpop.permute.xlu1 %235 }
  0x99   :  { %v315_v11 = vpop.permute.xlu0 %314 }
  0x9a   :  { %v320_v16 = vpop.permute.xlu1 %319 }
  0x9d   :  { %v325_v22 = vpop.permute.xlu0 %324 }
  0x9e   :  { %v330_v25 = vpop.permute.xlu1 %329 }
  0xcc   :  { %v399_v30 = vpop.f32.mrf.mxu0 }
  0xcd   :  { %v176_v50 = vadd.f32 %v399_v30, %v61_v44 }
  0xce   :  { %v167_v32 = vpop.f32.mrf.mxu0 }
  0xcf   :  { %v200_v59 = vmax.f32 %v176_v50, 0.0  ;;  %v168_v60 = vadd.f32 %v167_v32, %v51_v58 }
  0xd0   :  { %v400_v33 = vpop.f32.mrf.mxu0 }
  0xd1   :  { %v179_v46 = vadd.f32 %v400_v33, %v66_v40  ;;  %v198_v63 = vmax.f32 %v168_v60, 0.0 }
  0xd2   :  { %v170_v35 = vpop.f32.mrf.mxu0 }
  0xd3   :  { %v201_v55 = vmax.f32 %v179_v46, 0.0  ;;  %v171_v56 = vadd.f32 %v170_v35, %v56_v54 }
  0xd4   :  { %v403_v37 = vpop.f32.mrf.mxu0 }
  0xd5   :  { %v192_v39 = vadd.f32 %v403_v37, %v81_v31  ;;  %v207_v61 = vpack.c.bf16 %v201_v55, %v200_v59  ;;  %v199_v62 = vmax.f32 %v171_v56, 0.0  ;;  %v352_v31 = vshrl.u32 %v351_v28, 7 }
  0xd6   :  { %v183_v38 = vpop.f32.mrf.mxu0 }
  0xd7   :  { %v184_v42 = vadd.f32 %v183_v38, %v71_v29  ;;  %v204_v47 = vmax.f32 %v192_v39, 0.0  ;;  %v206_v0 = vpack.c.bf16 %v199_v62, %v198_v63 }
  0xd8   :  { %v404_v41 = vpop.f32.mrf.mxu0 }
  0xd9   :  { %v195_v43 = vadd.f32 %v404_v41, %v86_v36  ;;  %v202_v51 = vmax.f32 %v184_v42, 0.0  ;;  %v349_v36 = vpop.permute.xlu0 %348 }
  0xda   :  { %v186_v45 = vpop.f32.mrf.mxu0 }
  0xdb   :  { %v205_v48 = vmax.f32 %v195_v43, 0.0  ;;  %v187_v49 = vadd.f32 %v186_v45, %v76_v34  ;;  %v353_v34 = vsub.s32 0, %v352_v31 }
  0xdd   :  { %v203_v52 = vmax.f32 %v187_v49, 0.0  ;;  %v209_v53 = vpack.c.bf16 %v205_v48, %v204_v47  ;;  %v354_v38 = vrot.slane %v349_v36, %v353_v34 }
  0xdf   :  { %v208_v57 = vpack.c.bf16 %v203_v52, %v202_v51  ;;  %405 = vmatprep.subr.bf16.mxu1 %v209_v53 }
  0xe0   :  { %406 = vmatpush3.bf16.msra.mxu1 %v209_v53 }
  0xe1   :  { %407 = vmatprep.subr.bf16.mxu1 %v208_v57 }
  0xe4   :  { %408 = vmatpush3.bf16.msra.mxu1 %v208_v57 }
  0xe5   :  { %409 = vmatprep.subr.bf16.mxu1 %v207_v61 }
  0xe8   :  { %410 = vmatpush3.bf16.msra.mxu1 %v207_v61 }
  0xe9   :  { %411 = vmatprep.subr.bf16.mxu1 %v206_v0 }
  0xec   :  { %412 = vmatpush3.bf16.msra.mxu1 %v206_v0 }
  0xef   :  { %414 = vmatmul.mubr.msk.bf16.vlgmr.msra.gmra.mxu1 %vm248_vm3, %v428_v1 }
 0x1af   :  { %v415_v5 = vpop.f32.mrf.mxu1 }
 0x1b0   :  { %v298_v10 = vadd.f32 %v415_v5, %v231_v4 }
 0x1b1   :  { %v289_v7 = vpop.f32.mrf.mxu1 }
 0x1b2   :  { %v290_v8 = vadd.f32 %v289_v7, %v221_v2  ;;  %v306_v17 = vmax.f32 %v298_v10, 0.0 }
 0x1b3   :  { %v416_v9 = vpop.f32.mrf.mxu1 }
 0x1b4   :  { %v304_v13 = vmax.f32 %v290_v8, 0.0  ;;  %v301_v14 = vadd.f32 %v416_v9, %v236_v6  ;;  %v334_v23 = vmul.f32 %v325_v22, %v306_v17 }
 0x1b5   :  { %v292_v12 = vpop.f32.mrf.mxu1 }
 0x1b6   :  { %v293_v15 = vadd.f32 %v292_v12, %v226_v3  ;;  %v332_v19 = vmul.f32 %v315_v11, %v304_v13  ;;  %v307_v20 = vmax.f32 %v301_v14, 0.0 }
 0x1b8   :  { %v305_v18 = vmax.f32 %v293_v15, 0.0  ;;  %v335_v26 = vmul.f32 %v330_v25, %v307_v20 }
 0x1ba   :  { %v333_v21 = vmul.f32 %v320_v16, %v305_v18 }
 0x1bc   :  { %v336_v24 = vadd.f32 %v333_v21, %v332_v19 }
 0x1be   :  { %v337_v27 = vadd.f32 %v336_v24, %v334_v23 }
 0x1c0   :  { %v338_v29 = vadd.f32 %v337_v27, %v335_v26 }
 0x1c2   :  { %v339_v30 = vrot.slane %v338_v29, 4 }
 0x1c4   :  { %v340_v32 = vadd.f32 %v339_v30, %v338_v29 }
 0x1c6   :  { %v341_v33 = vrot.slane %v340_v32, 2 }
 0x1c8   :  { %v342_v35 = vadd.f32 %v341_v33, %v340_v32 }
 0x1ca   :  { %v343_v37 = vrot.slane %v342_v35, 1 }
 0x1cc   :  { %v344_v39 = vadd.f32 %v343_v37, %v342_v35 }
 0x1ce   :  { %v355_v40 = vadd.f32 %v354_v38, %v344_v39 }
 0x1d0   :  { %356 = vst [vmem:[#allocation3] sm:$0x1] %v355_v40 }
 0x1d1   :  { %440 = shalt.err (!%p437_p4)
}
 0x1d2   :  { %366 = dma.vmem_to_hbm [thread:$0]  %s364_s18, 16, %s582_s7, [#allocation4]  }
 0x1d3   :  { %449 = dma.done.wait [#allocation4], 16  }
 0x1d4   :  { %450 = vsyncadd [#allocation4], 4294967280 }
 0x1d5   :  { %370 = vsyncpa [#allocation4], 1 }

</bundles_post_ra>
